<compile_context>
chip_gen: v5e
topology: v5e:2x2
jax: 0.10.0
libtpu: 0.0.40
codegen_flags: <defaults>
</compile_context>

<pallas_src>
import math

import jax
import jax.numpy as jnp
from jax.experimental import pallas as pl
from jax.experimental.pallas import tpu as pltpu


def _mlp_kernel(x_ref, w1_ref, b1_ref, w2_ref, b2_ref, o_ref):
    # x_ref : (TM, P*C_in)    packed pixels, lane-dense
    # w1_ref: (P*C_in,  P*C_hid)  block-diagonal kron(I_P, W1), VMEM-resident
    # b1_ref: (1, P*C_hid)
    # w2_ref: (P*C_hid, P*C_out)  block-diagonal kron(I_P, W2), VMEM-resident
    # b2_ref: (1, P*C_out)
    # o_ref : (TM, P*C_out)   packed pixels, lane-dense -> unmasked vst
    #
    # Inputs are fed to the MXU in their native dtype (f32/bf16) with an f32
    # accumulate via preferred_element_type; the activation is cast back to
    # the second weight's dtype so bf16 weights keep the native MXU path.
    h = jnp.dot(x_ref[...], w1_ref[...], preferred_element_type=jnp.float32)
    h = jnp.tanh(h + b1_ref[...].astype(jnp.float32))          # f32 tanh on EUP
    y = jnp.dot(h.astype(w2_ref.dtype), w2_ref[...],
                preferred_element_type=jnp.float32)
    y = y + b2_ref[...].astype(jnp.float32)
    o_ref[...] = y.astype(o_ref.dtype)


def _round_up(x, m):
    return ((x + m - 1) // m) * m


def _pick_pack(c_in, c_hid, c_out, itemsize):
    """Pixels packed per row so that P*C_in is the smallest multiple of 128."""
    p = 128 // math.gcd(c_in, 128)
    # Keep the replicated block-diagonal weights comfortably small in VMEM.
    w_bytes = itemsize * p * p * (c_in * c_hid + c_hid * c_out)
    if w_bytes > (4 << 20):
        # Wide-channel fallback: channels are already (near) lane-dense.
        # TODO(synk): for very wide channels a K/N-tiled weight grid would be
        # preferable; not needed for this module (c_in=4, c_out=8).
        p = 1
    return max(p, 1)


def _pick_tile_m(m_rows, lane_in, lane_hid, lane_out, itemsize):
    """Largest multiple-of-8 row tile under a ~16 MiB residency budget.

    Counts double-buffered in/out tiles plus the f32 intermediates the kernel
    materializes; stays far below v7x's 64 MiB physical VMEM.
    """
    per_row = (2 * (lane_in + lane_out) * itemsize
               + 4 * (lane_in + 2 * lane_hid + 2 * lane_out))
    budget = 16 * 1024 * 1024
    cap = max(8, (budget // max(per_row, 1)) // 8 * 8)
    tile = min(4096, cap, _round_up(m_rows, 8))
    return max(8, (tile // 8) * 8)


def mlp_forward(x_nhwc, w1, b1, w2, b2, *, tile_m=None):
    """x_nhwc: (B, H, W, C_in); w1: (C_in, C_hid); w2: (C_hid, C_out)."""
    B, H, W, C_in = x_nhwc.shape
    C_hid = w1.shape[1]
    C_out = w2.shape[1]
    N = B * H * W
    dt = x_nhwc.dtype

    P = _pick_pack(C_in, C_hid, C_out, dt.itemsize)

    # Packed views are plain row-major reshapes of the NHWC buffers: no HBM
    # transposes anywhere.  Only a (rare) tail pad of < P rows if N % P != 0.
    x2 = x_nhwc.reshape(N, C_in)
    Np = _round_up(N, P)
    if Np != N:
        x2 = jnp.pad(x2, ((0, Np - N), (0, 0)))
    M = Np // P
    x_packed = x2.reshape(M, P * C_in)

    # Block-diagonal weights: x_packed @ kron(I_P, W) == packed view of x @ W.
    # Tiny (tens of KiB here); built once by XLA, resident in VMEM.
    w1_big = jnp.kron(jnp.eye(P, dtype=w1.dtype), w1)      # (P*C_in,  P*C_hid)
    w2_big = jnp.kron(jnp.eye(P, dtype=w2.dtype), w2)      # (P*C_hid, P*C_out)
    b1_big = jnp.tile(b1, P).reshape(1, P * C_hid)
    b2_big = jnp.tile(b2, P).reshape(1, P * C_out)

    if tile_m is None:
        tile_m = _pick_tile_m(M, P * C_in, P * C_hid, P * C_out, dt.itemsize)

    grid = (pl.cdiv(M, tile_m),)   # ragged last block is masked by Pallas

    out_packed = pl.pallas_call(
        _mlp_kernel,
        out_shape=jax.ShapeDtypeStruct((M, P * C_out), dt),
        grid_spec=pltpu.PrefetchScalarGridSpec(
            num_scalar_prefetch=0,
            grid=grid,
            in_specs=[
                pl.BlockSpec((tile_m, P * C_in), lambda i: (i, 0)),
                pl.BlockSpec((P * C_in, P * C_hid), lambda i: (0, 0)),
                pl.BlockSpec((1, P * C_hid), lambda i: (0, 0)),
                pl.BlockSpec((P * C_hid, P * C_out), lambda i: (0, 0)),
                pl.BlockSpec((1, P * C_out), lambda i: (0, 0)),
            ],
            out_specs=pl.BlockSpec((tile_m, P * C_out), lambda i: (i, 0)),
        ),
        compiler_params=pltpu.CompilerParams(
            # Row-tile axis sharded across TensorCores (matters on v7x's 2 TCs).
            dimension_semantics=("parallel",),
            # Above the 32 MiB scoped default, below v7x's 64 MiB physical.
            vmem_limit_bytes=48 * 1024 * 1024,
        ),
    )(x_packed, w1_big, b1_big, w2_big, b2_big)

    y = out_packed.reshape(Np, C_out)[:N]
    return y.reshape(B, H, W, C_out)


def init_mlp_params(key, c_in, c_out, dtype=jnp.float32):
    """Deterministic init mirroring nn.Conv2d defaults (kaiming-uniform-ish)."""
    c_hid = c_in // 2
    k1, k2, k3, k4 = jax.random.split(key, 4)

    bound1 = 1.0 / math.sqrt(c_in)   # fan_in = c_in * 1 * 1
    w1 = jax.random.uniform(k1, (c_in, c_hid), dtype, -bound1, bound1)
    b1 = jax.random.uniform(k2, (c_hid,), dtype, -bound1, bound1)

    bound2 = 1.0 / math.sqrt(c_hid)  # fan_in = c_hid * 1 * 1
    w2 = jax.random.uniform(k3, (c_hid, c_out), dtype, -bound2, bound2)
    b2 = jax.random.uniform(k4, (c_out,), dtype, -bound2, bound2)
    return w1, b1, w2, b2


def mlp_reference(x_nhwc, w1, b1, w2, b2):
    """Pure-JAX reference matching the PyTorch forward semantics."""
    h = jnp.tanh(jnp.einsum("bhwc,cd->bhwd", x_nhwc, w1) + b1)
    return jnp.einsum("bhwc,cd->bhwd", h, w2) + b2


if __name__ == "__main__":
    key = jax.random.PRNGKey(0)
    kx, kp = jax.random.split(key)

    B, H, W, C_in, C_out = 2, 16, 16, 4, 8  # NHWC input, as the torch forward expects
    x = jax.random.normal(kx, (B, H, W, C_in), dtype=jnp.float32)

    w1, b1, w2, b2 = init_mlp_params(kp, C_in, C_out)

    out = jax.jit(mlp_forward)(x, w1, b1, w2, b2)
    out = jax.block_until_ready(out)

    ref = mlp_reference(x, w1, b1, w2, b2)
    assert out.shape == (B, H, W, C_out), out.shape
    assert jnp.allclose(out, ref, atol=1e-5, rtol=1e-5), "mismatch vs reference"

    print("KERNEL_OK")
</pallas_src>

<mosaic_0001>
module attributes {stable_mosaic.version = 11 : i64} {
  func.func @_mlp_kernel(%arg0: i32, %arg1: memref<16x128xf32, #tpu.memory_space<vmem>>, %arg2: memref<128x64xf32, #tpu.memory_space<vmem>>, %arg3: memref<1x64xf32, #tpu.memory_space<vmem>>, %arg4: memref<64x256xf32, #tpu.memory_space<vmem>>, %arg5: memref<1x256xf32, #tpu.memory_space<vmem>>, %arg6: memref<16x256xf32, #tpu.memory_space<vmem>>) attributes {dimension_semantics = [#tpu.dimension_semantics<parallel>], iteration_bounds = array<i64: 1>, scalar_prefetch = 0 : i64, scratch_operands = 0 : i64, tpu.core_type = #tpu.core_type<tc>, window_params = [{transform_indices = @transform_0, window_bounds = array<i64: 16, 128>}, {pipeline_mode = #tpu.pipeline_mode<synchronous>, transform_indices = @transform_1, window_bounds = array<i64: 128, 64>}, {pipeline_mode = #tpu.pipeline_mode<synchronous>, transform_indices = @transform_2, window_bounds = array<i64: 1, 64>}, {pipeline_mode = #tpu.pipeline_mode<synchronous>, transform_indices = @transform_3, window_bounds = array<i64: 64, 256>}, {pipeline_mode = #tpu.pipeline_mode<synchronous>, transform_indices = @transform_4, window_bounds = array<i64: 1, 256>}, {transform_indices = @transform_5, window_bounds = array<i64: 16, 256>}]} {
    %c0 = arith.constant 0 : index
    %c0_0 = arith.constant 0 : index
    %0 = vector.load %arg1[%c0, %c0_0] : memref<16x128xf32, #tpu.memory_space<vmem>>, vector<16x128xf32>
    %c0_1 = arith.constant 0 : index
    %c0_2 = arith.constant 0 : index
    %1 = vector.load %arg2[%c0_1, %c0_2] : memref<128x64xf32, #tpu.memory_space<vmem>>, vector<128x64xf32>
    %cst = arith.constant dense<0.000000e+00> : vector<16x64xf32>
    %2 = tpu.matmul %0, %1, %cst {dimension_numbers = #tpu.dot_dimension_numbers<[1], [0], [0], [1], [0, 0, 1, 1], [], []>} : vector<16x128xf32>, vector<128x64xf32>, vector<16x64xf32> -> vector<16x64xf32>
    %c0_3 = arith.constant 0 : index
    %c0_4 = arith.constant 0 : index
    %3 = vector.load %arg3[%c0_3, %c0_4] : memref<1x64xf32, #tpu.memory_space<vmem>>, vector<1x64xf32>
    %4 = vector.broadcast %3 : vector<1x64xf32> to vector<16x64xf32>
    %5 = arith.addf %2, %4 : vector<16x64xf32>
    %6 = math.tanh %5 : vector<16x64xf32>
    %c0_5 = arith.constant 0 : index
    %c0_6 = arith.constant 0 : index
    %7 = vector.load %arg4[%c0_5, %c0_6] : memref<64x256xf32, #tpu.memory_space<vmem>>, vector<64x256xf32>
    %cst_7 = arith.constant dense<0.000000e+00> : vector<16x256xf32>
    %8 = tpu.matmul %6, %7, %cst_7 {dimension_numbers = #tpu.dot_dimension_numbers<[1], [0], [0], [1], [0, 0, 1, 1], [], []>} : vector<16x64xf32>, vector<64x256xf32>, vector<16x256xf32> -> vector<16x256xf32>
    %c0_8 = arith.constant 0 : index
    %c0_9 = arith.constant 0 : index
    %9 = vector.load %arg5[%c0_8, %c0_9] : memref<1x256xf32, #tpu.memory_space<vmem>>, vector<1x256xf32>
    %10 = vector.broadcast %9 : vector<1x256xf32> to vector<16x256xf32>
    %11 = arith.addf %8, %10 : vector<16x256xf32>
    %c0_10 = arith.constant 0 : index
    %c0_11 = arith.constant 0 : index
    %12 = vector.load %arg6[%c0_10, %c0_11] : memref<16x256xf32, #tpu.memory_space<vmem>>, vector<16x256xf32>
    tpu.vector_store %arg6[%c0_10, %c0_11], %11 {strides = array<i32>} : memref<16x256xf32, #tpu.memory_space<vmem>>, vector<16x256xf32>,
    return
  }
  func.func @transform_0(%arg0: i32) -> (i32, i32) {
    %c0_i32 = arith.constant 0 : i32
    %c0_i32_0 = arith.constant 0 : i32
    return %arg0, %c0_i32 : i32, i32
  }
  func.func @transform_1(%arg0: i32) -> (i32, i32) {
    %c0_i32 = arith.constant 0 : i32
    %c0_i32_0 = arith.constant 0 : i32
    %c0_i32_1 = arith.constant 0 : i32
    return %c0_i32, %c0_i32_0 : i32, i32
  }
  func.func @transform_2(%arg0: i32) -> (i32, i32) {
    %c0_i32 = arith.constant 0 : i32
    %c0_i32_0 = arith.constant 0 : i32
    %c0_i32_1 = arith.constant 0 : i32
    return %c0_i32, %c0_i32_0 : i32, i32
  }
  func.func @transform_3(%arg0: i32) -> (i32, i32) {
    %c0_i32 = arith.constant 0 : i32
    %c0_i32_0 = arith.constant 0 : i32
    %c0_i32_1 = arith.constant 0 : i32
    return %c0_i32, %c0_i32_0 : i32, i32
  }
  func.func @transform_4(%arg0: i32) -> (i32, i32) {
    %c0_i32 = arith.constant 0 : i32
    %c0_i32_0 = arith.constant 0 : i32
    %c0_i32_1 = arith.constant 0 : i32
    return %c0_i32, %c0_i32_0 : i32, i32
  }
  func.func @transform_5(%arg0: i32) -> (i32, i32) {
    %c0_i32 = arith.constant 0 : i32
    %c0_i32_0 = arith.constant 0 : i32
    return %arg0, %c0_i32 : i32, i32
  }
}

</mosaic_0001>

<bundles_post_ra>
// kernel: tile.13
= control target key start
LH: loop header
LB: loop body
LE: loop exit
PB: predicated region body
PF: predicated region fallthrough
CT: control target
= control target key end

     0   :  { %s40_s0 = inlined_call_operand.vmem [shape: f32[2], index: 0, kind: input, shape index: {}]   ;;  %s41_s1 = inlined_call_operand.vmem [shape: f32[32,2], index: 1, kind: output, shape index: {}]  }
   0x1   :  { %v4_v0 = vld [vmem:[%s40_s0] ss:$0 sm:$0xff] }
   0x2   :  { %5 = vst [vmem:[%s41_s1] sm:$0xff] %v4_v0 }
   0x3   :  { %12 = vst [vmem:[%s41_s1 + $0x8] sm:$0xff] %v4_v0 }
   0x4   :  { %13 = vst [vmem:[%s41_s1 + $0x10] sm:$0xff] %v4_v0 }
   0x5   :  { %14 = vst [vmem:[%s41_s1 + $0x18] sm:$0xff] %v4_v0 }

// kernel: tile.14
= control target key start
LH: loop header
LB: loop body
LE: loop exit
PB: predicated region body
PF: predicated region fallthrough
CT: control target
= control target key end

     0   :  { %s259_s10 = smov 62   ;;  %s260_s11 = smov 58   ;;  %vm3_vm0 = vcmask 15360   ;;  %vm9_vm1 = vcmask 523760   ;;  %vm15_vm2 = vcmask 507360   ;;  %vm21_vm3 = vcmask 490960   ;;  %s399_s0 = inlined_call_operand.vmem [shape: f32[32,2], index: 0, kind: input, shape index: {}]   ;;  %s400_s1 = inlined_call_operand.vmem [shape: f32[1,64], index: 1, kind: output, shape index: {}]  }
   0x1   :  { %v197_v0 = vld [vmem:[%s399_s0 + $0x1f] sm:$0x1]   ;;  %v199_v1 = vld [vmem:[%s399_s0 + $0x1d] sm:$0x1]   ;;  %v201_v2 = vld [vmem:[%s399_s0 + $0x1b] sm:$0x1]  }
   0x2   :  { %7 = vrot.lane.b32.xlu0 %v197_v0, %s259_s10  ;;  %19 = vrot.lane.b32.xlu1 %v199_v1, %s260_s11  ;;  %s261_s14 = smov 54   ;;  %v198_v3 = vld [vmem:[%s399_s0 + $0x1e] sm:$0x1]   ;;  %v200_v4 = vld [vmem:[%s399_s0 + $0x1c] sm:$0x1]   ;;  %s262_s19 = smov 60  }
   0x3   :  { %31 = vrot.lane.b32.xlu2 %v201_v2, %s261_s14  ;;  %s263_s20 = smov 56   ;;  %v202_v5 = vld [vmem:[%s399_s0 + $0x1a] sm:$0x1]   ;;  %s264_s23 = smov 52   ;;  %v203_v6 = vld [vmem:[%s399_s0 + $0x19] sm:$0x1]  }
   0x4   :  { %v204_v7 = vld [vmem:[%s399_s0 + $0x18] sm:$0x1]   ;;  %s265_s28 = smov 50   ;;  %s266_s29 = smov 48   ;;  %v205_v8 = vld [vmem:[%s399_s0 + $0x17] sm:$0x1]  }
   0x5   :  { %s267_s3 = smov 46   ;;  %v206_v9 = vld [vmem:[%s399_s0 + $0x16] sm:$0x1]   ;;  %v207_v10 = vld [vmem:[%s399_s0 + $0x15] sm:$0x1]   ;;  %s268_s8 = smov 44  }
   0x6   :  { %s269_s9 = smov 42   ;;  %v208_v11 = vld [vmem:[%s399_s0 + $0x14] sm:$0x1]   ;;  %s270_s12 = smov 40   ;;  %v209_v12 = vld [vmem:[%s399_s0 + $0x13] sm:$0x1]  }
   0x7   :  { %v210_v13 = vld [vmem:[%s399_s0 + $0x12] sm:$0x1]   ;;  %s271_s17 = smov 38   ;;  %s272_s18 = smov 36   ;;  %v211_v14 = vld [vmem:[%s399_s0 + $0x11] sm:$0x1]  }
   0x8   :  { %s273_s21 = smov 34   ;;  %v212_v15 = vld [vmem:[%s399_s0 + $0x10] sm:$0x1]   ;;  %v213_v16 = vld [vmem:[%s399_s0 + $0xf] sm:$0x1]   ;;  %s274_s26 = smov 32  }
   0x9   :  { %s275_s27 = smov 30   ;;  %v214_v17 = vld [vmem:[%s399_s0 + $0xe] sm:$0x1]   ;;  %s276_s30 = smov 28   ;;  %v215_v18 = vld [vmem:[%s399_s0 + $0xd] sm:$0x1]  }
   0xa   :  { %13 = vrot.lane.b32.xlu0 %v198_v3, %s262_s19  ;;  %25 = vrot.lane.b32.xlu1 %v200_v4, %s263_s20  ;;  %v216_v19 = vld [vmem:[%s399_s0 + $0xc] sm:$0x1]   ;;  %s277_s6 = smov 26   ;;  %s278_s7 = smov 24   ;;  %v217_v20 = vld [vmem:[%s399_s0 + $0xb] sm:$0x1]  }
   0xb   :  { %37 = vrot.lane.b32.xlu2 %v202_v5, %s264_s23  ;;  %s279_s10 = smov 22   ;;  %v218_v21 = vld [vmem:[%s399_s0 + $0xa] sm:$0x1]   ;;  %v219_v22 = vld [vmem:[%s399_s0 + $0x9] sm:$0x1]   ;;  %s280_s15 = smov 20  }
   0xc   :  { %s281_s16 = smov 18   ;;  %v220_v23 = vld [vmem:[%s399_s0 + $0x8] sm:$0x1]   ;;  %s282_s19 = smov 16   ;;  %v221_v24 = vld [vmem:[%s399_s0 + $0x7] sm:$0x1]  }
   0xd   :  { %v222_v25 = vld [vmem:[%s399_s0 + $0x6] sm:$0x1]   ;;  %s283_s24 = smov 14   ;;  %s284_s25 = smov 12   ;;  %v223_v26 = vld [vmem:[%s399_s0 + $0x5] sm:$0x1]  }
   0xe   :  { %v224_v27 = vld [vmem:[%s399_s0 + $0x4] sm:$0x1]   ;;  %v225_v28 = vld [vmem:[%s399_s0 + $0x3] sm:$0x1]   ;;  %s286_s4 = smov 8   ;;  %s287_s5 = smov 6  }
   0xf   :  { %v226_v29 = vld [vmem:[%s399_s0 + $0x2] sm:$0x1]   ;;  %v227_v30 = vld [vmem:[%s399_s0 + $0x1] sm:$0x1]   ;;  %s289_s11 = smov 2   ;;  %vm27_vm4 = vcmask 474560  }
  0x10   :  { %v2_v31 = vld [vmem:[%s399_s0] sm:$0x1]   ;;  %vm33_vm5 = vcmask 458160   ;;  %vm39_vm6 = vcmask 441760   ;;  %vm45_vm7 = vcmask 425360   ;;  %vm51_vm8 = vcmask 408960  }
  0x11   :  { %4 = vst.msk [vmem:[#allocation0] sm:$0x1] %vm3_vm0, %v2_v31   ;;  %vm57_vm9 = vcmask 392560   ;;  %vm63_vm10 = vcmask 376160   ;;  %vm69_vm11 = vcmask 359760   ;;  %vm75_vm12 = vcmask 343360  }
  0x12   :  { %43 = vrot.lane.b32.xlu0 %v203_v6, %s265_s28  ;;  %49 = vrot.lane.b32.xlu1 %v204_v7, %s266_s29  ;;  %s285_s28 = smov 10   ;;  %vm81_vm13 = vcmask 326960   ;;  %vm87_vm14 = vcmask 310560   ;;  %vm93_vm15 = vcmask 294160   ;;  %vm99_vm0 = vcmask 277760  }
  0x13   :  { %55 = vrot.lane.b32.xlu2 %v205_v8, %s267_s3 }
  0x1a   :  { %61 = vrot.lane.b32.xlu0 %v206_v9, %s268_s8  ;;  %67 = vrot.lane.b32.xlu1 %v207_v10, %s269_s9  ;;  %s288_s8 = smov 4  }
  0x1b   :  { %73 = vrot.lane.b32.xlu2 %v208_v11, %s270_s12 }
  0x22   :  { %79 = vrot.lane.b32.xlu0 %v209_v12, %s271_s17  ;;  %85 = vrot.lane.b32.xlu1 %v210_v13, %s272_s18 }
  0x23   :  { %91 = vrot.lane.b32.xlu2 %v211_v14, %s273_s21 }
  0x2a   :  { %97 = vrot.lane.b32.xlu0 %v212_v15, %s274_s26  ;;  %103 = vrot.lane.b32.xlu1 %v213_v16, %s275_s27 }
  0x2b   :  { %109 = vrot.lane.b32.xlu2 %v214_v17, %s276_s30 }
  0x32   :  { %115 = vrot.lane.b32.xlu0 %v215_v18, %s277_s6  ;;  %121 = vrot.lane.b32.xlu1 %v216_v19, %s278_s7 }
  0x33   :  { %127 = vrot.lane.b32.xlu2 %v217_v20, %s279_s10 }
  0x3a   :  { %133 = vrot.lane.b32.xlu0 %v218_v21, %s280_s15  ;;  %139 = vrot.lane.b32.xlu1 %v219_v22, %s281_s16 }
  0x3b   :  { %145 = vrot.lane.b32.xlu2 %v220_v23, %s282_s19 }
  0x42   :  { %151 = vrot.lane.b32.xlu0 %v221_v24, %s283_s24  ;;  %157 = vrot.lane.b32.xlu1 %v222_v25, %s284_s25 }
  0x43   :  { %163 = vrot.lane.b32.xlu2 %v223_v26, %s285_s28 }
  0x4a   :  { %169 = vrot.lane.b32.xlu0 %v224_v27, %s286_s4  ;;  %175 = vrot.lane.b32.xlu1 %v225_v28, %s287_s5 }
  0x4b   :  { %181 = vrot.lane.b32.xlu2 %v226_v29, %s288_s8 }
  0x52   :  { %187 = vrot.lane.b32.xlu0 %v227_v30, %s289_s11 }
  0x5d   :  { %v32_v32 = vpop.permute.xlu2 %31  }
  0x65   :  { %v38_v33 = vpop.permute.xlu2 %37  }
  0x6d   :  { %v56_v34 = vpop.permute.xlu2 %55  }
  0x74   :  { %v8_v35 = vpop.permute.xlu0 %7   ;;  %v20_v36 = vpop.permute.xlu1 %19  }
  0x75   :  { %10 = vst.msk [vmem:[#allocation0] sm:$0x1] %vm9_vm1, %v8_v35   ;;  %v74_v37 = vpop.permute.xlu2 %73   ;;  %vm105_vm1 = vcmask 261360  }
  0x7c   :  { %v14_v38 = vpop.permute.xlu0 %13   ;;  %v26_v39 = vpop.permute.xlu1 %25  }
  0x7d   :  { %16 = vst.msk [vmem:[#allocation0] sm:$0x1] %vm15_vm2, %v14_v38   ;;  %v92_v40 = vpop.permute.xlu2 %91   ;;  %vm111_vm2 = vcmask 244960  }
  0x7e   :  { %22 = vst.msk [vmem:[#allocation0] sm:$0x1] %vm21_vm3, %v20_v36   ;;  %vm117_vm3 = vcmask 228560  }
  0x7f   :  { %28 = vst.msk [vmem:[#allocation0] sm:$0x1] %vm27_vm4, %v26_v39   ;;  %vm123_vm4 = vcmask 212160  }
  0x80   :  { %34 = vst.msk [vmem:[#allocation0] sm:$0x1] %vm33_vm5, %v32_v32   ;;  %vm129_vm5 = vcmask 195760  }
  0x81   :  { %40 = vst.msk [vmem:[#allocation0] sm:$0x1] %vm39_vm6, %v38_v33   ;;  %vm135_vm6 = vcmask 179360  }
  0x84   :  { %v44_v41 = vpop.permute.xlu0 %43   ;;  %v50_v42 = vpop.permute.xlu1 %49  }
  0x85   :  { %46 = vst.msk [vmem:[#allocation0] sm:$0x1] %vm45_vm7, %v44_v41   ;;  %v110_v43 = vpop.permute.xlu2 %109   ;;  %vm141_vm7 = vcmask 162960  }
  0x86   :  { %52 = vst.msk [vmem:[#allocation0] sm:$0x1] %vm51_vm8, %v50_v42   ;;  %vm147_vm8 = vcmask 146560  }
  0x87   :  { %58 = vst.msk [vmem:[#allocation0] sm:$0x1] %vm57_vm9, %v56_v34   ;;  %vm153_vm9 = vcmask 130160  }
  0x8c   :  { %v62_v44 = vpop.permute.xlu0 %61   ;;  %v68_v45 = vpop.permute.xlu1 %67  }
  0x8d   :  { %64 = vst.msk [vmem:[#allocation0] sm:$0x1] %vm63_vm10, %v62_v44   ;;  %v128_v46 = vpop.permute.xlu2 %127   ;;  %vm159_vm10 = vcmask 113760  }
  0x8e   :  { %70 = vst.msk [vmem:[#allocation0] sm:$0x1] %vm69_vm11, %v68_v45   ;;  %vm165_vm11 = vcmask 97360  }
  0x8f   :  { %76 = vst.msk [vmem:[#allocation0] sm:$0x1] %vm75_vm12, %v74_v37   ;;  %vm171_vm12 = vcmask 80960  }
  0x94   :  { %v80_v47 = vpop.permute.xlu0 %79   ;;  %v86_v48 = vpop.permute.xlu1 %85  }
  0x95   :  { %82 = vst.msk [vmem:[#allocation0] sm:$0x1] %vm81_vm13, %v80_v47   ;;  %v146_v49 = vpop.permute.xlu2 %145   ;;  %vm177_vm13 = vcmask 64560  }
  0x96   :  { %88 = vst.msk [vmem:[#allocation0] sm:$0x1] %vm87_vm14, %v86_v48   ;;  %vm183_vm14 = vcmask 48160  }
  0x97   :  { %94 = vst.msk [vmem:[#allocation0] sm:$0x1] %vm93_vm15, %v92_v40   ;;  %vm189_vm15 = vcmask 31760  }
  0x9c   :  { %v98_v50 = vpop.permute.xlu0 %97   ;;  %v104_v51 = vpop.permute.xlu1 %103  }
  0x9d   :  { %100 = vst.msk [vmem:[#allocation0] sm:$0x1] %vm99_vm0, %v98_v50   ;;  %v164_v52 = vpop.permute.xlu2 %163  }
  0x9e   :  { %106 = vst.msk [vmem:[#allocation0] sm:$0x1] %vm105_vm1, %v104_v51  }
  0x9f   :  { %112 = vst.msk [vmem:[#allocation0] sm:$0x1] %vm111_vm2, %v110_v43  }
  0xa4   :  { %v116_v53 = vpop.permute.xlu0 %115   ;;  %v122_v54 = vpop.permute.xlu1 %121  }
  0xa5   :  { %118 = vst.msk [vmem:[#allocation0] sm:$0x1] %vm117_vm3, %v116_v53   ;;  %v182_v55 = vpop.permute.xlu2 %181  }
  0xa6   :  { %124 = vst.msk [vmem:[#allocation0] sm:$0x1] %vm123_vm4, %v122_v54  }
  0xa7   :  { %130 = vst.msk [vmem:[#allocation0] sm:$0x1] %vm129_vm5, %v128_v46  }
  0xac   :  { %v134_v56 = vpop.permute.xlu0 %133   ;;  %v140_v57 = vpop.permute.xlu1 %139  }
  0xad   :  { %136 = vst.msk [vmem:[#allocation0] sm:$0x1] %vm135_vm6, %v134_v56  }
  0xae   :  { %142 = vst.msk [vmem:[#allocation0] sm:$0x1] %vm141_vm7, %v140_v57  }
  0xaf   :  { %148 = vst.msk [vmem:[#allocation0] sm:$0x1] %vm147_vm8, %v146_v49  }
  0xb4   :  { %v152_v58 = vpop.permute.xlu0 %151   ;;  %v158_v59 = vpop.permute.xlu1 %157  }
  0xb5   :  { %154 = vst.msk [vmem:[#allocation0] sm:$0x1] %vm153_vm9, %v152_v58  }
  0xb6   :  { %160 = vst.msk [vmem:[#allocation0] sm:$0x1] %vm159_vm10, %v158_v59  }
  0xb7   :  { %166 = vst.msk [vmem:[#allocation0] sm:$0x1] %vm165_vm11, %v164_v52  }
  0xbc   :  { %v170_v60 = vpop.permute.xlu0 %169   ;;  %v176_v61 = vpop.permute.xlu1 %175  }
  0xbd   :  { %172 = vst.msk [vmem:[#allocation0] sm:$0x1] %vm171_vm12, %v170_v60  }
  0xbe   :  { %178 = vst.msk [vmem:[#allocation0] sm:$0x1] %vm177_vm13, %v176_v61  }
  0xbf   :  { %184 = vst.msk [vmem:[#allocation0] sm:$0x1] %vm183_vm14, %v182_v55  }
  0xc4   :  { %v188_v62 = vpop.permute.xlu0 %187  }
  0xc5   :  { %190 = vst.msk [vmem:[#allocation0] sm:$0x1] %vm189_vm15, %v188_v62  }
  0xcc   :  { %v193_v63 = vld [vmem:[#allocation0] sm:$0x1] }
  0xcd   :  { %196 = vst [vmem:[%s400_s1] sm:$0x1] %v193_v63 }

// kernel: tile.18
= control target key start
LH: loop header
LB: loop body
LE: loop exit
PB: predicated region body
PF: predicated region fallthrough
CT: control target
= control target key end

     0   :  { %s40_s0 = inlined_call_operand.vmem [shape: f32[8], index: 0, kind: input, shape index: {}]   ;;  %s41_s1 = inlined_call_operand.vmem [shape: f32[32,8], index: 1, kind: output, shape index: {}]  }
   0x1   :  { %v4_v0 = vld [vmem:[%s40_s0] ss:$0 sm:$0xff] }
   0x2   :  { %5 = vst [vmem:[%s41_s1] sm:$0xff] %v4_v0 }
   0x3   :  { %12 = vst [vmem:[%s41_s1 + $0x8] sm:$0xff] %v4_v0 }
   0x4   :  { %13 = vst [vmem:[%s41_s1 + $0x10] sm:$0xff] %v4_v0 }
   0x5   :  { %14 = vst [vmem:[%s41_s1 + $0x18] sm:$0xff] %v4_v0 }

// kernel: tile.19
= control target key start
LH: loop header
LB: loop body
LE: loop exit
PB: predicated region body
PF: predicated region fallthrough
CT: control target
= control target key end

     0   :  { %s7_s6 = smov 3  ;;  %s21_s9 = smov 3  ;;  %vm4_vm0 = vcmask 64512   ;;  %vm11_vm1 = vcmask 1048512   ;;  %vm18_vm2 = vcmask 982912   ;;  %vm25_vm3 = vcmask 917312   ;;  %s233_s0 = inlined_call_operand.vmem [shape: f32[32,8], index: 0, kind: input, shape index: {}]   ;;  %s234_s1 = inlined_call_operand.vmem [shape: f32[1,256], index: 1, kind: output, shape index: {}]  }
   0x1   :  { %v123_v0 = vld [vmem:[%s233_s0 + $0xf] ss:$16 sm:%s7_s6]   ;;  %s154_s10 = smov 120   ;;  %v125_v1 = vld [vmem:[%s233_s0 + $0xd] ss:$16 sm:%s21_s9]   ;;  %s155_s13 = smov 104  }
   0x2   :  { %9 = vrot.lane.b32.xlu0 %v123_v0, %s154_s10  ;;  %23 = vrot.lane.b32.xlu1 %v125_v1, %s155_s13  ;;  %s14_s14 = smov 3  ;;  %s28_s15 = smov 3  ;;  %vm32_vm4 = vcmask 851712   ;;  %vm39_vm5 = vcmask 786112   ;;  %vm46_vm6 = vcmask 720512   ;;  %vm53_vm7 = vcmask 654912  }
   0x3   :  { %v124_v2 = vld [vmem:[%s233_s0 + $0xe] ss:$16 sm:%s14_s14]   ;;  %v126_v3 = vld [vmem:[%s233_s0 + $0xc] ss:$16 sm:%s28_s15]   ;;  %s35_s20 = smov 3  ;;  %s156_s23 = smov 112  }
   0x4   :  { %v127_v4 = vld [vmem:[%s233_s0 + $0xb] ss:$16 sm:%s35_s20]   ;;  %s157_s24 = smov 88   ;;  %s158_s25 = smov 96   ;;  %vm60_vm8 = vcmask 589312   ;;  %vm67_vm9 = vcmask 523712  }
   0x5   :  { %37 = vrot.lane.b32.xlu2 %v127_v4, %s157_s24  ;;  %s49_s26 = smov 3  ;;  %s42_s27 = smov 3  ;;  %vm74_vm10 = vcmask 458112   ;;  %vm81_vm11 = vcmask 392512   ;;  %vm88_vm12 = vcmask 326912   ;;  %vm95_vm13 = vcmask 261312  }
   0x6   :  { %s56_s28 = smov 3  ;;  %v129_v5 = vld [vmem:[%s233_s0 + $0x9] ss:$16 sm:%s49_s26]   ;;  %v128_v6 = vld [vmem:[%s233_s0 + $0xa] ss:$16 sm:%s42_s27]   ;;  %s159_s6 = smov 72  }
   0x7   :  { %v130_v7 = vld [vmem:[%s233_s0 + $0x8] ss:$16 sm:%s56_s28]   ;;  %s160_s7 = smov 80   ;;  %s161_s8 = smov 64   ;;  %vm102_vm14 = vcmask 195712   ;;  %vm109_vm15 = vcmask 130112  }
   0x8   :  { %s70_s9 = smov 3  ;;  %s63_s10 = smov 3 }
   0x9   :  { %s77_s11 = smov 3  ;;  %v132_v8 = vld [vmem:[%s233_s0 + $0x6] ss:$16 sm:%s70_s9]   ;;  %v131_v9 = vld [vmem:[%s233_s0 + $0x7] ss:$16 sm:%s63_s10]   ;;  %s162_s18 = smov 48  }
   0xa   :  { %16 = vrot.lane.b32.xlu0 %v124_v2, %s156_s23  ;;  %30 = vrot.lane.b32.xlu1 %v126_v3, %s158_s25  ;;  %v133_v10 = vld [vmem:[%s233_s0 + $0x5] ss:$16 sm:%s77_s11]   ;;  %s163_s19 = smov 56   ;;  %s164_s20 = smov 40  }
   0xb   :  { %s91_s21 = smov 3  ;;  %s84_s22 = smov 3 }
   0xc   :  { %s98_s23 = smov 3  ;;  %v135_v11 = vld [vmem:[%s233_s0 + $0x3] ss:$16 sm:%s91_s21]   ;;  %v134_v12 = vld [vmem:[%s233_s0 + $0x4] ss:$16 sm:%s84_s22]   ;;  %s165_s30 = smov 24  }
   0xd   :  { %44 = vrot.lane.b32.xlu2 %v128_v6, %s160_s7  ;;  %v136_v13 = vld [vmem:[%s233_s0 + $0x2] ss:$16 sm:%s98_s23]   ;;  %s166_s2 = smov 32   ;;  %s167_s3 = smov 16  }
   0xe   :  { %s105_s4 = smov 3  ;;  %s168_s7 = smov 8  }
   0xf   :  { %v137_v14 = vld [vmem:[%s233_s0 + $0x1] ss:$16 sm:%s105_s4]  }
  0x12   :  { %51 = vrot.lane.b32.xlu0 %v129_v5, %s159_s6  ;;  %58 = vrot.lane.b32.xlu1 %v130_v7, %s161_s8  ;;  %s2_s8 = smov 3 }
  0x13   :  { %v3_v15 = vld [vmem:[%s233_s0] ss:$16 sm:%s2_s8]  }
  0x14   :  { %5 = vst.msk [vmem:[#allocation0] ss:$8 sm:$0x3] %vm4_vm0, %v3_v15  }
  0x15   :  { %65 = vrot.lane.b32.xlu2 %v131_v9, %s163_s19 }
  0x1a   :  { %72 = vrot.lane.b32.xlu0 %v132_v8, %s162_s18  ;;  %79 = vrot.lane.b32.xlu1 %v133_v10, %s164_s20 }
  0x1d   :  { %86 = vrot.lane.b32.xlu2 %v134_v12, %s166_s2 }
  0x22   :  { %93 = vrot.lane.b32.xlu0 %v135_v11, %s165_s30  ;;  %100 = vrot.lane.b32.xlu1 %v136_v13, %s167_s3 }
  0x25   :  { %107 = vrot.lane.b32.xlu2 %v137_v14, %s168_s7 }
  0x5f   :  { %v38_v16 = vpop.permute.xlu2 %37  }
  0x67   :  { %v45_v17 = vpop.permute.xlu2 %44  }
  0x6f   :  { %v66_v19 = vpop.permute.xlu2 %65  }
  0x74   :  { %v10_v18 = vpop.permute.xlu0 %9   ;;  %v24_v20 = vpop.permute.xlu1 %23  }
  0x75   :  { %12 = vst.msk [vmem:[#allocation0] ss:$8 sm:$0x3] %vm11_vm1, %v10_v18  }
  0x77   :  { %v87_v22 = vpop.permute.xlu2 %86  }
  0x7c   :  { %v17_v21 = vpop.permute.xlu0 %16   ;;  %v31_v23 = vpop.permute.xlu1 %30  }
  0x7d   :  { %19 = vst.msk [vmem:[#allocation0] ss:$8 sm:$0x3] %vm18_vm2, %v17_v21  }
  0x7e   :  { %26 = vst.msk [vmem:[#allocation0] ss:$8 sm:$0x3] %vm25_vm3, %v24_v20  }
  0x7f   :  { %33 = vst.msk [vmem:[#allocation0] ss:$8 sm:$0x3] %vm32_vm4, %v31_v23   ;;  %v108_v25 = vpop.permute.xlu2 %107  }
  0x80   :  { %40 = vst.msk [vmem:[#allocation0] ss:$8 sm:$0x3] %vm39_vm5, %v38_v16  }
  0x81   :  { %47 = vst.msk [vmem:[#allocation0] ss:$8 sm:$0x3] %vm46_vm6, %v45_v17  }
  0x84   :  { %v52_v24 = vpop.permute.xlu0 %51   ;;  %v59_v26 = vpop.permute.xlu1 %58  }
  0x85   :  { %54 = vst.msk [vmem:[#allocation0] ss:$8 sm:$0x3] %vm53_vm7, %v52_v24  }
  0x86   :  { %61 = vst.msk [vmem:[#allocation0] ss:$8 sm:$0x3] %vm60_vm8, %v59_v26  }
  0x87   :  { %68 = vst.msk [vmem:[#allocation0] ss:$8 sm:$0x3] %vm67_vm9, %v66_v19  }
  0x8c   :  { %v73_v27 = vpop.permute.xlu0 %72   ;;  %v80_v28 = vpop.permute.xlu1 %79  }
  0x8d   :  { %75 = vst.msk [vmem:[#allocation0] ss:$8 sm:$0x3] %vm74_vm10, %v73_v27  }
  0x8e   :  { %82 = vst.msk [vmem:[#allocation0] ss:$8 sm:$0x3] %vm81_vm11, %v80_v28  }
  0x8f   :  { %89 = vst.msk [vmem:[#allocation0] ss:$8 sm:$0x3] %vm88_vm12, %v87_v22  }
  0x94   :  { %v94_v29 = vpop.permute.xlu0 %93   ;;  %v101_v30 = vpop.permute.xlu1 %100  }
  0x95   :  { %96 = vst.msk [vmem:[#allocation0] ss:$8 sm:$0x3] %vm95_vm13, %v94_v29  }
  0x96   :  { %103 = vst.msk [vmem:[#allocation0] ss:$8 sm:$0x3] %vm102_vm14, %v101_v30  }
  0x97   :  { %110 = vst.msk [vmem:[#allocation0] ss:$8 sm:$0x3] %vm109_vm15, %v108_v25  }
  0x9e   :  { %v113_v31 = vld [vmem:[#allocation0] sm:$0x1]  ;;  %v118_v32 = vld [vmem:[#allocation0 + $0x8] sm:$0x1] }
  0x9f   :  { %116 = vst [vmem:[%s234_s1] sm:$0x1] %v113_v31 }
  0xa0   :  { %138 = vst [vmem:[%s234_s1 + $0x1] sm:$0x1] %v118_v32 }

// kernel: mlp_forward.1
= control target key start
LH: loop header
LB: loop body
LE: loop exit
PB: predicated region body
PF: predicated region fallthrough
CT: control target
= control target key end

     0   :  { %vm89_vm0 = vcmask 523264   ;;  %s325_s1 = inlined_call_operand.vmem [shape: f32[128,64], index: 1, kind: input, shape index: {}]   ;;  %s326_s3 = inlined_call_operand.vmem [shape: f32[64,256], index: 3, kind: input, shape index: {}]   ;;  %s327_s2 = inlined_call_operand.vmem [shape: f32[1,64], index: 2, kind: input, shape index: {}]   ;;  %s328_s0 = inlined_call_operand.vmem [shape: f32[16,128], index: 0, kind: input, shape index: {}]   ;;  %s329_s4 = inlined_call_operand.vmem [shape: f32[1,256], index: 4, kind: input, shape index: {}]   ;;  %s330_s5 = inlined_call_operand.vmem [shape: f32[16,256], index: 5, kind: output, shape index: {}]  }
   0x1   :  { %v37_v0 = vld [vmem:[%s325_s1 + $0x78] sm:$0xff]  ;;  %v36_v1 = vld [vmem:[%s325_s1 + $0x70] sm:$0xff]  ;;  %v35_v2 = vld [vmem:[%s325_s1 + $0x68] sm:$0xff] }
   0x2   :  { %42 = vmatpush.msra.mxu0 %v37_v0  ;;  %154 = vmatpush.msra.mxu3 %v37_v0  ;;  %v34_v3 = vld [vmem:[%s325_s1 + $0x60] sm:$0xff]  ;;  %v33_v4 = vld [vmem:[%s325_s1 + $0x58] sm:$0xff]  ;;  %v81_v5 = vld [vmem:[%s326_s3 + $0x70] sm:$0xff] }
   0x3   :  { %v82_v6 = vld [vmem:[%s326_s3 + $0x78] sm:$0xff]  ;;  %v79_v7 = vld [vmem:[%s326_s3 + $0x60] sm:$0xff]  ;;  %v80_v8 = vld [vmem:[%s326_s3 + $0x68] sm:$0xff]  ;;  %104 = vmatpush.msra.mxu1 %v81_v5 }
   0x4   :  { %43 = vmatpush.msra.mxu0 %v36_v1  ;;  %155 = vmatpush.msra.mxu3 %v36_v1  ;;  %v32_v9 = vld [vmem:[%s325_s1 + $0x50] sm:$0xff]  ;;  %v78_v11 = vld [vmem:[%s326_s3 + $0x58] sm:$0xff]  ;;  %v31_v12 = vld [vmem:[%s325_s1 + $0x48] sm:$0xff] }
   0x5   :  { %127 = vmatpush.msra.mxu2 %v82_v6  ;;  %v77_v10 = vld [vmem:[%s326_s3 + $0x50] sm:$0xff]  ;;  %105 = vmatpush.msra.mxu1 %v79_v7  ;;  %v30_v13 = vld [vmem:[%s325_s1 + $0x40] sm:$0xff]  ;;  %v29_v14 = vld [vmem:[%s325_s1 + $0x38] sm:$0xff] }
   0x6   :  { %44 = vmatpush.msra.mxu0 %v35_v2  ;;  %156 = vmatpush.msra.mxu3 %v35_v2  ;;  %v28_v15 = vld [vmem:[%s325_s1 + $0x30] sm:$0xff]  ;;  %v27_v16 = vld [vmem:[%s325_s1 + $0x28] sm:$0xff]  ;;  %v26_v17 = vld [vmem:[%s325_s1 + $0x20] sm:$0xff] }
   0x7   :  { %128 = vmatpush.msra.mxu2 %v80_v8  ;;  %106 = vmatpush.msra.mxu1 %v77_v10  ;;  %v25_v18 = vld [vmem:[%s325_s1 + $0x18] sm:$0xff]  ;;  %v24_v19 = vld [vmem:[%s325_s1 + $0x10] sm:$0xff]  ;;  %v23_v20 = vld [vmem:[%s325_s1 + $0x8] sm:$0xff] }
   0x8   :  { %45 = vmatpush.msra.mxu0 %v34_v3  ;;  %157 = vmatpush.msra.mxu3 %v34_v3  ;;  %v22_v21 = vld [vmem:[%s325_s1] sm:$0xff]  ;;  %v21_v23 = vld [vmem:[%s328_s0 + $0x8] sm:$0xff]  ;;  %v73_v26 = vld [vmem:[%s326_s3 + $0x30] sm:$0xff] }
   0x9   :  { %129 = vmatpush.msra.mxu2 %v78_v11  ;;  %v20_v22 = vld [vmem:[%s328_s0] sm:$0xff]  ;;  %v76_v25 = vld [vmem:[%s326_s3 + $0x48] sm:$0xff]  ;;  %v74_v27 = vld [vmem:[%s326_s3 + $0x38] sm:$0xff] }
   0xa   :  { %46 = vmatpush.msra.mxu0 %v33_v4  ;;  %158 = vmatpush.msra.mxu3 %v33_v4  ;;  %v75_v24 = vld [vmem:[%s326_s3 + $0x40] sm:$0xff]  ;;  %v72_v29 = vld [vmem:[%s326_s3 + $0x28] sm:$0xff]  ;;  %v69_v30 = vld [vmem:[%s326_s3 + $0x10] sm:$0xff] }
   0xb   :  { %107 = vmatpush.msra.mxu1 %v75_v24  ;;  %130 = vmatpush.msra.mxu2 %v76_v25  ;;  %v71_v28 = vld [vmem:[%s326_s3 + $0x20] sm:$0xff]  ;;  %v70_v31 = vld [vmem:[%s326_s3 + $0x18] sm:$0xff]  ;;  %v68_v33 = vld [vmem:[%s326_s3 + $0x8] sm:$0xff] }
   0xc   :  { %47 = vmatpush.msra.mxu0 %v32_v9  ;;  %159 = vmatpush.msra.mxu3 %v32_v9  ;;  %v67_v32 = vld [vmem:[%s326_s3] sm:$0xff] }
   0xd   :  { %108 = vmatpush.msra.mxu1 %v73_v26  ;;  %131 = vmatpush.msra.mxu2 %v74_v27  ;;  %v170_v34 = vld [vmem:[%s327_s2] ss:$0 sm:$0xff] }
   0xe   :  { %48 = vmatpush.msra.mxu0 %v31_v12  ;;  %160 = vmatpush.msra.mxu3 %v31_v12  ;;  %v83_v41 = vld [vmem:[%s329_s4] sm:$0x3] }
   0xf   :  { %109 = vmatpush.msra.mxu1 %v71_v28  ;;  %132 = vmatpush.msra.mxu2 %v72_v29  ;;  %v85_v42 = vperm.slane %v83_v41, 0  ;;  %v86_v45 = vperm.slane %v83_v41, 1 }
  0x10   :  { %49 = vmatpush.msra.mxu0 %v30_v13  ;;  %161 = vmatpush.msra.mxu3 %v30_v13 }
  0x11   :  { %110 = vmatpush.msra.mxu1 %v69_v30  ;;  %133 = vmatpush.msra.mxu2 %v70_v31 }
  0x12   :  { %50 = vmatpush.msra.mxu0 %v29_v14  ;;  %162 = vmatpush.msra.mxu3 %v29_v14 }
  0x13   :  { %111 = vmatpush.msra.mxu1 %v67_v32  ;;  %134 = vmatpush.msra.mxu2 %v68_v33 }
  0x14   :  { %51 = vmatpush.msra.mxu0 %v28_v15  ;;  %163 = vmatpush.msra.mxu3 %v28_v15 }
  0x16   :  { %52 = vmatpush.msra.mxu0 %v27_v16  ;;  %164 = vmatpush.msra.mxu3 %v27_v16 }
  0x18   :  { %53 = vmatpush.msra.mxu0 %v26_v17  ;;  %165 = vmatpush.msra.mxu3 %v26_v17 }
  0x1a   :  { %54 = vmatpush.msra.mxu0 %v25_v18  ;;  %166 = vmatpush.msra.mxu3 %v25_v18 }
  0x1c   :  { %55 = vmatpush.msra.mxu0 %v24_v19  ;;  %167 = vmatpush.msra.mxu3 %v24_v19 }
  0x1e   :  { %56 = vmatpush.msra.mxu0 %v23_v20  ;;  %168 = vmatpush.msra.mxu3 %v23_v20 }
  0x20   :  { %57 = vmatpush.msra.mxu0 %v22_v21  ;;  %169 = vmatpush.msra.mxu3 %v22_v21 }
  0x21   :  { %58 = vmatmul.f32.vlgmr.msra.gmra.mxu0 %v20_v22  ;;  %61 = vmatmul.f32.vlgmr.msra.gmra.mxu3 %v21_v23 }
  0x9e   :  { %v59_v35 = vpop.f32.mrf.mxu0 }
  0x9f   :  { %v60_v36 = vadd.f32 %v170_v34, %v59_v35 }
  0xa1   :  { %171 = vtanh.f32 %v60_v36 }
  0xa4   :  { %v62_v37 = vpop.f32.mrf.mxu3 }
  0xa5   :  { %v63_v38 = vadd.f32 %v170_v34, %v62_v37 }
  0xa7   :  { %v172_v39 = vpop.eup %171  ;;  %173 = vtanh.f32 %v63_v38 }
  0xa8   :  { %150 = vmatmul.msk.f32.vlgmr.msra.gmra.mxu1 %vm89_vm0, %v172_v39  ;;  %152 = vmatmul.msk.f32.vlgmr.msra.gmra.mxu2 %vm89_vm0, %v172_v39 }
  0xad   :  { %v174_v40 = vpop.eup %173 }
  0xb0   :  { %151 = vmatmul.msk.f32.gmra.mxu1 %vm89_vm0, %v174_v40  ;;  %153 = vmatmul.msk.f32.gmra.mxu2 %vm89_vm0, %v174_v40 }
 0x125   :  { %v113_v43 = vpop.f32.mrf.mxu1 }
 0x126   :  { %v114_v44 = vadd.f32 %v113_v43, %v85_v42 }
 0x128   :  { %142 = vst [vmem:[%s330_s5] sm:$0xff] %v114_v44 }
 0x12b   :  { %v136_v46 = vpop.f32.mrf.mxu2 }
 0x12c   :  { %v137_v47 = vadd.f32 %v136_v46, %v86_v45 }
 0x12d   :  { %v116_v48 = vpop.f32.mrf.mxu1 }
 0x12e   :  { %143 = vst [vmem:[%s330_s5 + $0x8] sm:$0xff] %v137_v47  ;;  %v117_v49 = vadd.f32 %v116_v48, %v85_v42 }
 0x130   :  { %144 = vst [vmem:[%s330_s5 + $0x10] sm:$0xff] %v117_v49 }
 0x133   :  { %v139_v50 = vpop.f32.mrf.mxu2 }
 0x134   :  { %v140_v51 = vadd.f32 %v139_v50, %v86_v45 }
 0x136   :  { %145 = vst [vmem:[%s330_s5 + $0x18] sm:$0xff] %v140_v51 }

</bundles_post_ra>
